<compile_context>
chip_gen: v6e
topology: v6e:2x2x1
jax: 0.10.0
libtpu: 0.0.40
codegen_flags: <defaults>
</compile_context>

<pallas_src>
import jax
import jax.numpy as jnp
from jax.experimental import pallas as pl
from jax.experimental.pallas import tpu as pltpu

_NEG = -1e30  # "minus infinity" that stays finite under f32 arithmetic


def _round_up(v, m):
    return ((v + m - 1) // m) * m


def _tpu_defaults():
    """Per-generation defaults: (row tile, scoped-VMEM cap in bytes)."""
    vmem_cap = 64 << 20          # conservative: v7x per-TensorCore VMEM
    tile = 256                   # v6e / v7x MXU is 2x256x256
    try:
        vmem_cap = int(pltpu.get_tpu_info().vmem_capacity_bytes)
    except Exception:
        pass
    try:
        kind = jax.devices()[0].device_kind.lower()
        if ("v5 lite" in kind) or ("v5e" in kind) or ("v5litepod" in kind):
            tile = 128           # v5e MXU is 128x128 -> M=128 already matched
    except Exception:
        pass
    cap = (48 << 20) if vmem_cap <= (64 << 20) else (100 << 20)
    return tile, cap


def _pick_row_tile(n_rows, tq_req):
    """Row tile that (a) never pads tiny inputs up to a full 128/256-row tile
    and (b) is a multiple of 128 whenever more than one tile is needed, so the
    key/lane axis of transposed & key blocks stays lane-dense and legal."""
    tn = _round_up(max(n_rows, 1), 8)
    t = max(8, min(512, _round_up(max(int(tq_req), 1), 8)))
    if tn <= t:
        return tn                # single tile covering all rows (full-extent)
    return _round_up(t, 128)     # multi-tile: keep 128-aligned lane blocks


# ---------------------------------------------------------------------------
# MaskedEmotionAtt
# ---------------------------------------------------------------------------

def _proj_kernel(h_ref, wt_ref, b_ref, x_ref):
    """x = h @ W^T + b for one row tile (bf16 MXU operands, f32 accumulation)."""
    x = jnp.dot(h_ref[...], wt_ref[...], preferred_element_type=jnp.float32)
    x_ref[...] = (x + b_ref[...]).astype(x_ref.dtype)


def _masked_att_kernel(lo_ref, hi_ref,                       # scalar prefetch
                       hq_ref, xT_ref, hv_ref, segq_ref, segk_ref,
                       o_ref, m_sc, l_sc, acc_sc):
    """Segment-windowed, online-softmax masked attention.

    hq_ref  : (T, Dp)  bf16  query rows of h (fixed across the key axis)
    xT_ref  : (Dp, T)  bf16  key tile of lin(h), transposed (lane-dense keys)
    hv_ref  : (T, Dp)  bf16  key tile of h (values)
    segq_ref: (T, 1)   int32 segment id per query row (-1 = padding)
    segk_ref: (1, T)   int32 segment id per key row
    o_ref   : (T, Dp)  f32   output (written once, at the last key step)
    """
    i = pl.program_id(0)
    k = pl.program_id(1)

    @pl.when(k == 0)
    def _init():
        m_sc[...] = jnp.full_like(m_sc, _NEG)
        l_sc[...] = jnp.zeros_like(l_sc)
        acc_sc[...] = jnp.zeros_like(acc_sc)

    # Only key blocks overlapping this query tile's dialogues do any work.
    @pl.when((k >= lo_ref[i]) & (k <= hi_ref[i]))
    def _step():
        s = jnp.dot(hq_ref[...], xT_ref[...],
                    preferred_element_type=jnp.float32)          # (T, T) f32
        seg_q = segq_ref[...]                                     # (T, 1)
        seg_k = segk_ref[...]                                     # (1, T)
        mask = (seg_q == seg_k) & (seg_q >= 0)
        s = jnp.where(mask, s, _NEG)

        m_prev = m_sc[...]
        m_new = jnp.maximum(m_prev, jnp.max(s, axis=-1, keepdims=True))
        alpha = jnp.exp(m_prev - m_new)
        p = jnp.where(mask, jnp.exp(s - m_new), jnp.float32(0.0))
        l_sc[...] = alpha * l_sc[...] + jnp.sum(p, axis=-1, keepdims=True)
        acc_sc[...] = alpha * acc_sc[...] + jnp.dot(
            p.astype(jnp.bfloat16), hv_ref[...],
            preferred_element_type=jnp.float32)
        m_sc[...] = m_new

    @pl.when(k == pl.num_programs(1) - 1)
    def _finalize():
        inv = pl.reciprocal(jnp.maximum(l_sc[...], jnp.float32(1e-30)),
                            approx=True)
        valid = (segq_ref[...] >= 0).astype(jnp.float32)   # zero padding rows
        o_ref[...] = acc_sc[...] * (inv * valid)


def masked_emotion_att(h, text_len_tensor, weight, bias, *, tq=None):
    """h: (N, D) f32, text_len_tensor: (B,) i32, weight: (D, D), bias: (D,)."""
    N, D = h.shape
    B = text_len_tensor.shape[0]
    def_tile, vmem_cap = _tpu_defaults()
    T = _pick_row_tile(N, def_tile if tq is None else tq)
    Dp = _round_up(D, 128)
    Np = _round_up(max(N, 1), T)
    nqt = Np // T
    nkt = Np // T

    # ---- glue (plain JAX): pad + bf16 cast, segment ids, key-block windows ----
    h_bf = jnp.zeros((Np, Dp), jnp.bfloat16).at[:N, :D].set(h.astype(jnp.bfloat16))
    w_t = jnp.zeros((Dp, Dp), jnp.bfloat16).at[:D, :D].set(
        weight.T.astype(jnp.bfloat16))
    b2d = jnp.zeros((1, Dp), jnp.float32).at[0, :D].set(bias.astype(jnp.float32))

    lengths = text_len_tensor.astype(jnp.int32)
    ends = jnp.cumsum(lengths)
    starts = ends - lengths
    idx = jnp.arange(Np, dtype=jnp.int32)
    inside = (idx[:, None] >= starts[None, :]) & (idx[:, None] < ends[None, :])
    valid = inside.any(axis=1)
    seg = jnp.where(valid, jnp.argmax(inside, axis=1).astype(jnp.int32),
                    jnp.int32(-1))                               # (Np,), -1 = pad
    seg_row = seg.reshape(Np, 1)
    seg_col = seg.reshape(1, Np)

    # Per-query-tile key-block window [kb_lo, kb_hi] covering every dialogue
    # that intersects the tile.  Padding rows use a neutral (hi<lo-ish) range.
    seg_c = jnp.clip(seg, 0, B - 1)
    row_lo = jnp.where(valid, starts[seg_c], jnp.int32(Np - 1))
    row_hi = jnp.where(valid, ends[seg_c] - 1, jnp.int32(0))
    kb_lo = (jnp.min(row_lo.reshape(nqt, T), axis=1) // T).astype(jnp.int32)
    kb_hi = (jnp.max(row_hi.reshape(nqt, T), axis=1) // T).astype(jnp.int32)

    # ---- phase 1: x = lin(h) once, bf16 out ----
    x_bf = pl.pallas_call(
        _proj_kernel,
        out_shape=jax.ShapeDtypeStruct((Np, Dp), jnp.bfloat16),
        grid=(nqt,),
        in_specs=[pl.BlockSpec((T, Dp), lambda i: (i, 0)),
                  pl.BlockSpec((Dp, Dp), lambda i: (0, 0)),
                  pl.BlockSpec((1, Dp), lambda i: (0, 0))],
        out_specs=pl.BlockSpec((T, Dp), lambda i: (i, 0)),
        compiler_params=pltpu.CompilerParams(dimension_semantics=("parallel",)),
    )(h_bf, w_t, b2d)

    # x transposed once (lane-dense key axis for the scores matmul; avoids any
    # per-key-tile transpose inside the attention grid).
    xT_bf = x_bf.T                                              # (Dp, Np) bf16

    # Scoped-VMEM budget: small, window-sized tiles only (no N^2 temporaries).
    est = (2 * 2 * (T * Dp * 2)        # hq + hv bf16 tiles, double-buffered
           + 2 * (Dp * T * 2)          # x^T bf16 key tile, double-buffered
           + 2 * (T * Dp * 4)          # output tile, double-buffered
           + T * Dp * 4                # f32 accumulator scratch
           + 6 * T * 128 * 4           # m/l scratch + seg blocks (lane-padded)
           + 8 * T * T * 4             # (T, T) f32 softmax temporaries
           + (8 << 20))                # headroom
    vmem_bytes = int(min(max(est, 16 << 20), vmem_cap))

    def _kc(i, k, lo, hi):             # clamp key block index into the window
        return jnp.minimum(jnp.maximum(k, lo[i]), hi[i])

    def q_map(i, k, lo, hi):
        return (i, 0)

    def key_col_map(i, k, lo, hi):     # blocks whose LAST axis is the key axis
        return (0, _kc(i, k, lo, hi))

    def key_row_map(i, k, lo, hi):     # blocks whose FIRST axis is the key axis
        return (_kc(i, k, lo, hi), 0)

    # ---- phase 2: segment-windowed attention (query tiles x key tiles) ----
    out_pad = pl.pallas_call(
        _masked_att_kernel,
        out_shape=jax.ShapeDtypeStruct((Np, Dp), jnp.float32),
        grid_spec=pltpu.PrefetchScalarGridSpec(
            num_scalar_prefetch=2,
            grid=(nqt, nkt),
            in_specs=[pl.BlockSpec((T, Dp), q_map),        # h query rows
                      pl.BlockSpec((Dp, T), key_col_map),  # x^T key tile
                      pl.BlockSpec((T, Dp), key_row_map),  # h key tile (values)
                      pl.BlockSpec((T, 1), q_map),         # seg per query row
                      pl.BlockSpec((1, T), key_col_map)],  # seg per key row
            out_specs=pl.BlockSpec((T, Dp), q_map),
            scratch_shapes=[pltpu.VMEM((T, 1), jnp.float32),   # running max
                            pltpu.VMEM((T, 1), jnp.float32),   # running denom
                            pltpu.VMEM((T, Dp), jnp.float32)]),  # accumulator
        compiler_params=pltpu.CompilerParams(
            dimension_semantics=("parallel", "arbitrary"),
            vmem_limit_bytes=vmem_bytes),
    )(kb_lo, kb_hi, h_bf, xT_bf, h_bf, seg_row, seg_col)

    return out_pad[:N, :D]


# ---------------------------------------------------------------------------
# Classifier head: relu(lin1(h)) -> lin2 -> log_softmax -> argmax  (fused)
# ---------------------------------------------------------------------------

def _classifier_head_kernel(h_ref, w1t_ref, b1_ref, w2t_ref, b2_ref,
                            logp_ref, yhat_ref):
    hidden = jnp.dot(h_ref[...], w1t_ref[...],
                     preferred_element_type=jnp.float32) + b1_ref[...]
    hidden = jnp.maximum(hidden, jnp.float32(0.0))       # ReLU (dropout = id)
    scores = jnp.dot(hidden.astype(jnp.bfloat16), w2t_ref[...],
                     preferred_element_type=jnp.float32) + b2_ref[...]

    m = jnp.max(scores, axis=-1, keepdims=True)
    e = jnp.exp(scores - m)
    lse = m + jnp.log(jnp.sum(e, axis=-1, keepdims=True))
    logp = scores - lse
    logp_ref[...] = logp

    ncls = logp.shape[-1]
    col = jax.lax.broadcasted_iota(jnp.int32, logp.shape, 1)
    best = jnp.max(logp, axis=-1, keepdims=True)
    yhat_ref[...] = jnp.min(jnp.where(logp >= best, col, jnp.int32(ncls)),
                            axis=-1, keepdims=True)


def classifier_forward(h, lin1_w, lin1_b, lin2_w, lin2_b, *, tq=None):
    """Classifier.forward (use_highway=False, inference-mode dropout)."""
    N, D = h.shape
    H = lin1_w.shape[0]
    C = lin2_w.shape[0]
    def_tile, _ = _tpu_defaults()
    T = _pick_row_tile(N, def_tile if tq is None else tq)
    Dp, Hp, Cp = _round_up(D, 128), _round_up(H, 128), _round_up(C, 128)
    Np = _round_up(max(N, 1), T)

    neg = jnp.float32(_NEG)
    h_bf = jnp.zeros((Np, Dp), jnp.bfloat16).at[:N, :D].set(h.astype(jnp.bfloat16))
    w1t = jnp.zeros((Dp, Hp), jnp.bfloat16).at[:D, :H].set(
        lin1_w.T.astype(jnp.bfloat16))
    b1p = jnp.zeros((1, Hp), jnp.float32).at[0, :H].set(lin1_b.astype(jnp.float32))
    w2t = jnp.zeros((Hp, Cp), jnp.bfloat16).at[:H, :C].set(
        lin2_w.T.astype(jnp.bfloat16))
    # Padded classes get -1e30 logits so they never win softmax / argmax.
    b2p = jnp.full((1, Cp), neg, jnp.float32).at[0, :C].set(
        lin2_b.astype(jnp.float32))

    grid = (Np // T,)
    logp_pad, yhat_pad = pl.pallas_call(
        _classifier_head_kernel,
        out_shape=(jax.ShapeDtypeStruct((Np, Cp), jnp.float32),
                   jax.ShapeDtypeStruct((Np, 1), jnp.int32)),
        grid=grid,
        in_specs=[pl.BlockSpec((T, Dp), lambda i: (i, 0)),
                  pl.BlockSpec((Dp, Hp), lambda i: (0, 0)),
                  pl.BlockSpec((1, Hp), lambda i: (0, 0)),
                  pl.BlockSpec((Hp, Cp), lambda i: (0, 0)),
                  pl.BlockSpec((1, Cp), lambda i: (0, 0))],
        out_specs=(pl.BlockSpec((T, Cp), lambda i: (i, 0)),
                   pl.BlockSpec((T, 1), lambda i: (i, 0))),
        compiler_params=pltpu.CompilerParams(dimension_semantics=("parallel",)),
    )(h_bf, w1t, b1p, w2t, b2p)

    return logp_pad[:N, :C], yhat_pad[:N, 0]


# ---------------------------------------------------------------------------
# Pure-JAX references (ports of the PyTorch code, for verification)
# ---------------------------------------------------------------------------

def emotion_att_reference(h, text_len_tensor, weight, bias):
    x = h @ weight.T + bias
    ret = jnp.zeros_like(h)
    s = 0
    for bi in range(text_len_tensor.shape[0]):
        cur_len = int(text_len_tensor[bi])
        y = x[s:s + cur_len]
        z = h[s:s + cur_len]
        scores = z @ y.T
        probs = jax.nn.softmax(scores, axis=1)
        out = jnp.sum(z[None, :, :] * probs[:, :, None], axis=1)
        ret = ret.at[s:s + cur_len, :].set(out)
        s += cur_len
    return ret


def classifier_head_reference(h, lin1_w, lin1_b, lin2_w, lin2_b):
    hidden = jax.nn.relu(h @ lin1_w.T + lin1_b)
    scores = hidden @ lin2_w.T + lin2_b
    logp = jax.nn.log_softmax(scores, axis=1)
    return logp, jnp.argmax(logp, axis=-1).astype(jnp.int32)


if __name__ == "__main__":
    key = jax.random.PRNGKey(0)
    k = jax.random.split(key, 9)

    # ---------------- MaskedEmotionAtt: small single-tile case ----------------
    N, D = 16, 32
    hidden_size, tag_size = 32, 6
    h = jax.random.normal(k[0], (N, D), jnp.float32) * 0.5
    text_len = jnp.array([5, 8], dtype=jnp.int32)   # sum=13 < N -> 3 padding rows

    att_w = jax.random.normal(k[1], (D, D), jnp.float32) * 0.05
    att_b = jax.random.normal(k[2], (D,), jnp.float32) * 0.05

    out = jax.block_until_ready(masked_emotion_att(h, text_len, att_w, att_b))
    ref = emotion_att_reference(h, text_len, att_w, att_b)
    assert out.shape == (N, D)
    err = float(jnp.max(jnp.abs(out - ref)))
    assert jnp.allclose(out, ref, atol=2e-2, rtol=2e-2), \
        f"emotion-att (small) max abs err {err}"

    # -------- MaskedEmotionAtt: multi-tile case (exercises key windows) -------
    N2 = 300
    h2 = jax.random.normal(k[3], (N2, D), jnp.float32) * 0.5
    text_len2 = jnp.array([40, 75, 23, 88, 51, 17], dtype=jnp.int32)  # sum=294

    out2 = jax.block_until_ready(
        masked_emotion_att(h2, text_len2, att_w, att_b, tq=128))
    ref2 = emotion_att_reference(h2, text_len2, att_w, att_b)
    err2 = float(jnp.max(jnp.abs(out2 - ref2)))
    assert jnp.allclose(out2, ref2, atol=2e-2, rtol=2e-2), \
        f"emotion-att (windowed) max abs err {err2}"

    # ------------------------ Classifier forward head -------------------------
    w1 = jax.random.normal(k[4], (hidden_size, D), jnp.float32) * 0.2
    b1 = jax.random.normal(k[5], (hidden_size,), jnp.float32) * 0.1
    w2 = jax.random.normal(k[6], (tag_size, hidden_size), jnp.float32) * 0.2
    b2 = jax.random.normal(k[7], (tag_size,), jnp.float32) * 0.1

    logp, y_hat = classifier_forward(h, w1, b1, w2, b2)
    y_hat = jax.block_until_ready(y_hat)
    logp_ref, yhat_ref = classifier_head_reference(h, w1, b1, w2, b2)
    assert logp.shape == (N, tag_size) and y_hat.shape == (N,)
    lerr = float(jnp.max(jnp.abs(logp - logp_ref)))
    assert jnp.allclose(logp, logp_ref, atol=3e-2, rtol=3e-2), \
        f"log_prob max abs err {lerr}"
    # argmax must agree with the kernel's own log-probs; vs the reference only
    # compare rows whose top-2 margin exceeds the numerical tolerance.
    assert bool(jnp.all(y_hat == jnp.argmax(logp, axis=-1))), "in-kernel argmax wrong"
    srt = jnp.sort(logp_ref, axis=-1)
    gap = srt[:, -1] - srt[:, -2]
    assert bool(jnp.all((y_hat == yhat_ref) | (gap <= 1e-1))), "argmax vs reference"

    print("KERNEL_OK")
</pallas_src>

<mosaic_0001>
module attributes {stable_mosaic.version = 11 : i64} {
  func.func @_proj_kernel(%arg0: i32, %arg1: memref<16x128xbf16, #tpu.memory_space<vmem>>, %arg2: memref<128x128xbf16, #tpu.memory_space<vmem>>, %arg3: memref<1x128xf32, #tpu.memory_space<vmem>>, %arg4: memref<16x128xbf16, #tpu.memory_space<vmem>>) attributes {dimension_semantics = [#tpu.dimension_semantics<parallel>], iteration_bounds = array<i64: 1>, scalar_prefetch = 0 : i64, scratch_operands = 0 : i64, tpu.core_type = #tpu.core_type<tc>, window_params = [{transform_indices = @transform_0, window_bounds = array<i64: 16, 128>}, {pipeline_mode = #tpu.pipeline_mode<synchronous>, transform_indices = @transform_1, window_bounds = array<i64: 128, 128>}, {pipeline_mode = #tpu.pipeline_mode<synchronous>, transform_indices = @transform_2, window_bounds = array<i64: 1, 128>}, {transform_indices = @transform_3, window_bounds = array<i64: 16, 128>}]} {
    %c0 = arith.constant 0 : index
    %c0_0 = arith.constant 0 : index
    %0 = vector.load %arg1[%c0, %c0_0] : memref<16x128xbf16, #tpu.memory_space<vmem>>, vector<16x128xbf16>
    %c0_1 = arith.constant 0 : index
    %c0_2 = arith.constant 0 : index
    %1 = vector.load %arg2[%c0_1, %c0_2] : memref<128x128xbf16, #tpu.memory_space<vmem>>, vector<128x128xbf16>
    %cst = arith.constant dense<0.000000e+00> : vector<16x128xf32>
    %2 = tpu.matmul %0, %1, %cst {dimension_numbers = #tpu.dot_dimension_numbers<[1], [0], [0], [1], [0, 0, 1, 1], [], []>} : vector<16x128xbf16>, vector<128x128xbf16>, vector<16x128xf32> -> vector<16x128xf32>
    %c0_3 = arith.constant 0 : index
    %c0_4 = arith.constant 0 : index
    %3 = vector.load %arg3[%c0_3, %c0_4] : memref<1x128xf32, #tpu.memory_space<vmem>>, vector<1x128xf32>
    %4 = vector.broadcast %3 : vector<1x128xf32> to vector<16x128xf32>
    %5 = arith.addf %2, %4 : vector<16x128xf32>
    %6 = arith.truncf %5 : vector<16x128xf32> to vector<16x128xbf16>
    %c0_5 = arith.constant 0 : index
    %c0_6 = arith.constant 0 : index
    %7 = vector.load %arg4[%c0_5, %c0_6] : memref<16x128xbf16, #tpu.memory_space<vmem>>, vector<16x128xbf16>
    tpu.vector_store %arg4[%c0_5, %c0_6], %6 {strides = array<i32>} : memref<16x128xbf16, #tpu.memory_space<vmem>>, vector<16x128xbf16>,
    return
  }
  func.func @transform_0(%arg0: i32) -> (i32, i32) {
    %c0_i32 = arith.constant 0 : i32
    %c0_i32_0 = arith.constant 0 : i32
    return %arg0, %c0_i32 : i32, i32
  }
  func.func @transform_1(%arg0: i32) -> (i32, i32) {
    %c0_i32 = arith.constant 0 : i32
    %c0_i32_0 = arith.constant 0 : i32
    %c0_i32_1 = arith.constant 0 : i32
    return %c0_i32, %c0_i32_0 : i32, i32
  }
  func.func @transform_2(%arg0: i32) -> (i32, i32) {
    %c0_i32 = arith.constant 0 : i32
    %c0_i32_0 = arith.constant 0 : i32
    %c0_i32_1 = arith.constant 0 : i32
    return %c0_i32, %c0_i32_0 : i32, i32
  }
  func.func @transform_3(%arg0: i32) -> (i32, i32) {
    %c0_i32 = arith.constant 0 : i32
    %c0_i32_0 = arith.constant 0 : i32
    return %arg0, %c0_i32 : i32, i32
  }
}

</mosaic_0001>

<bundles_post_ra>
// kernel: tpu_custom_call.1
= control target key start
LH: loop header
LB: loop body
LE: loop exit
PB: predicated region body
PF: predicated region fallthrough
CT: control target
= control target key end

     0   :  { %8 = vsyncpa [#allocation3], 0  ;;  %s370_s0 = inlined_call_operand.hbm [shape: bf16[16,128], index: 0, kind: input, shape index: {}]   ;;  %s371_s1 = inlined_call_operand.hbm [shape: bf16[128,128], index: 1, kind: input, shape index: {}]   ;;  %s372_s2 = inlined_call_operand.vmem [shape: f32[1,128], index: 2, kind: input, shape index: {}]   ;;  %s373_s3 = inlined_call_operand.hbm [shape: bf16[16,128], index: 3, kind: output, shape index: {}]  }
   0x1   :  { %9 = vsyncpa [#allocation6], 0 }
   0x2   :  { %10 = vsyncpa [#allocation4], 0  ;;  %s322_s12 = smov [#allocation2]  }
   0x3   :  { %s16_s13 = sshll.u32 %s322_s12, 4  ;;  %s17_s13 = int_to_ptr.vmem [resolvable:$true] %s16_s13 }
   0x4   :  { %s264_s14 = scalar_lea.vmem %s17_s13, 128  ;;  %p269_p1 = scmp.lt.s32.totalorder %s17_s13, %s17_s13 }
   0x5   :  { %p265_p0 = scmp.ne.s32.totalorder %s17_s13, %s264_s14  ;;  %p270_p2 = scmp.lt.s32.totalorder %s264_s14, %s264_s14 }
   0x7   :  { %p271_p3 = por %p270_p2, %p269_p1 }
   0x9   :  { %p272_p4 = pnand %p271_p3, %p265_p0 }
   0xb   :  { %275 = shalt.err (!%p272_p4)
}
   0xc   :  { %s323_s15 = smov 64   ;;  %s324_s16 = smov 4  }
   0xd   :  { %22 = dma.hbm_to_vmem [thread:$0]  %s370_s0, 128, %s17_s13, [#allocation3], %s323_s15, %s323_s15, %s324_s16  }
   0xe   :  { %s325_s19 = smov [#allocation5]  }
   0xf   :  { %s28_s20 = sshll.u32 %s325_s19, 4  ;;  %s29_s20 = int_to_ptr.vmem [resolvable:$true] %s28_s20 }
  0x10   :  { %s284_s21 = scalar_lea.vmem %s29_s20, 1024  ;;  %p289_p6 = scmp.lt.s32.totalorder %s29_s20, %s29_s20 }
  0x11   :  { %p285_p5 = scmp.ne.s32.totalorder %s29_s20, %s284_s21  ;;  %p290_p7 = scmp.lt.s32.totalorder %s284_s21, %s284_s21 }
  0x13   :  { %p291_p8 = por %p290_p7, %p289_p6 }
  0x15   :  { %p292_p9 = pnand %p291_p8, %p285_p5 }
  0x17   :  { %295 = shalt.err (!%p292_p9)
}
  0x18   :  { %34 = dma.hbm_to_vmem [thread:$0]  %s371_s1, 1024, %s29_s20, [#allocation6], %s323_s15, %s323_s15, %s324_s16  }
  0x19   :  { %316 = dma.done.wait [#allocation3], 128  }
  0x1a   :  { %317 = vsyncadd [#allocation3], 4294967168 }
  0x1b   :  { %318 = dma.done.wait [#allocation6], 1024  }
  0x1c   :  { %319 = vsyncadd [#allocation6], 4294966272  ;;  %v326_v0 = vmov 0.0   ;;  %vm327_vm0 = vmmov 0   ;;  %v247_v1 = vld [vmem:[#allocation5 + $0x38] sm:$0xff]   ;;  %v248_v2 = vld [vmem:[#allocation5 + $0x30] sm:$0xff]  }
  0x1d   :  { %220 = vmatprep.subr.bf16.mxu0 %v326_v0  ;;  %236 = vmatprep.mubr.msk.bf16.mxu0 %vm327_vm0, %v326_v0  ;;  %v249_v3 = vld [vmem:[#allocation5 + $0x28] sm:$0xff]   ;;  %v250_v4 = vld [vmem:[#allocation5 + $0x20] sm:$0xff]   ;;  %v251_v5 = vld [vmem:[#allocation5 + $0x18] sm:$0xff]   ;;  %s328_s24 = smov [#allocation7]  }
  0x1e   :  { %221 = vmatpush3.bf16.msra.mxu0 %v247_v1  ;;  %v252_v6 = vld [vmem:[#allocation5 + $0x10] sm:$0xff]   ;;  %v253_v7 = vld [vmem:[#allocation5 + $0x8] sm:$0xff]   ;;  %v254_v8 = vld [vmem:[#allocation5] sm:$0xff]   ;;  %s179_s25 = sshll.u32 %s328_s24, 4  ;;  %s180_s25 = int_to_ptr.vmem [resolvable:$true] %s179_s25 }
  0x1f   :  { %222 = vmatprep.subr.bf16.mxu0 %v326_v0  ;;  %v255_v9 = vld [vmem:[#allocation2] sm:$0xff]   ;;  %s296_s26 = scalar_lea.vmem %s180_s25, 128  ;;  %p301_p11 = scmp.lt.s32.totalorder %s180_s25, %s180_s25 }
  0x20   :  { %v192_v11 = vld [vmem:[%s372_s2] ss:$0 sm:$0xff]  ;;  %p297_p10 = scmp.ne.s32.totalorder %s180_s25, %s296_s26  ;;  %p302_p12 = scmp.lt.s32.totalorder %s296_s26, %s296_s26 }
  0x22   :  { %223 = vmatpush3.bf16.msra.mxu0 %v248_v2  ;;  %p303_p13 = por %p302_p12, %p301_p11 }
  0x23   :  { %224 = vmatprep.subr.bf16.mxu0 %v326_v0 }
  0x24   :  { %p304_p0 = pnand %p303_p13, %p297_p10 }
  0x26   :  { %225 = vmatpush3.bf16.msra.mxu0 %v249_v3 }
  0x27   :  { %226 = vmatprep.subr.bf16.mxu0 %v326_v0 }
  0x2a   :  { %227 = vmatpush3.bf16.msra.mxu0 %v250_v4 }
  0x2b   :  { %228 = vmatprep.subr.bf16.mxu0 %v326_v0 }
  0x2e   :  { %229 = vmatpush3.bf16.msra.mxu0 %v251_v5 }
  0x2f   :  { %230 = vmatprep.subr.bf16.mxu0 %v326_v0 }
  0x32   :  { %231 = vmatpush3.bf16.msra.mxu0 %v252_v6 }
  0x33   :  { %232 = vmatprep.subr.bf16.mxu0 %v326_v0 }
  0x36   :  { %233 = vmatpush3.bf16.msra.mxu0 %v253_v7 }
  0x37   :  { %234 = vmatprep.subr.bf16.mxu0 %v326_v0 }
  0x3a   :  { %235 = vmatpush3.bf16.msra.mxu0 %v254_v8 }
  0x3d   :  { %237 = vmatmul.mubr.bf16.vlgmr.msra.gmra.mxu0 %v255_v9 }
  0xfd   :  { %v157_v10 = vpop.f32.mrf.mxu0 }
  0xfe   :  { %v158_v14 = vadd.f32 %v192_v11, %v157_v10 }
  0xff   :  { %v238_v12 = vpop.f32.mrf.mxu0 }
 0x101   :  { %v160_v13 = vpop.f32.mrf.mxu0 }
 0x102   :  { %v161_v15 = vadd.f32 %v192_v11, %v160_v13 }
 0x103   :  { %v239_v16 = vpop.f32.mrf.mxu0 }
 0x104   :  { %v209_v17 = vpack.c.bf16 %v161_v15, %v158_v14 }
 0x106   :  { %210 = vst [vmem:[#allocation7] sm:$0xff] %v209_v17  }
 0x107   :  { %307 = shalt.err (!%p304_p0)
}
 0x108   :  { %185 = dma.vmem_to_hbm [thread:$0]  %s180_s25, 128, %s373_s3, [#allocation4], %s323_s15, %s323_s15, %s324_s16  }
 0x109   :  { %320 = dma.done.wait [#allocation4], 128  }
 0x10a   :  { %321 = vsyncadd [#allocation4], 4294967168 }
 0x10b   :  { %189 = vsyncpa [#allocation3], 1 }
 0x10c   :  { %190 = vsyncpa [#allocation6], 1 }
 0x10d   :  { %191 = vsyncpa [#allocation4], 1 }

</bundles_post_ra>
